<compile_context>
chip_gen: v7x
topology: tpu7x:2x2x1
jax: 0.10.0
libtpu: 0.0.40
codegen_flags: <defaults>
</compile_context>

<pallas_src>
import numpy as np
import jax
import jax.numpy as jnp
from jax.experimental import pallas as pl
from jax.experimental.pallas import tpu as pltpu

# ----- problem sizes -----
N_NODES = 16      # total nodes across the batch
G_GRAPHS = 2      # graphs in the batch
G_PAD = 8         # pooled rows padded to one full f32 sublane group
IN_F = 3          # GraphConv(3, 128)
IN_PAD = 16       # input features zero-padded to 16 (== N_NODES, lane width of graph blob)
HID = 128
OUT_F = 138       # Linear(128, 138)
OUT_PAD = 256     # fc output padded to 2*128 lanes (sliced afterwards)

# ----- graph blob layout: (GB_ROWS, N_NODES) bf16 -----
GB_X_ROW = 0                    # rows [0:16)  node features (cols 0:3 real)
GB_A_ROW = 16                   # rows [16:32) dense adjacency A[dst, src]
GB_P_ROW = 32                   # rows [32:40) mean-pool matrix (rows 0:2 real)
GB_ROWS = 48

# ----- conv weight blob layout: (W1_BLOB_ROWS, HID) bf16 -----
W1_ROWS = 2 * IN_PAD            # rows [0:32)    vstack(W1_self, W1_nei)
B1_ROW = 32                     # row 32         b1   (rows 33..47 zero)
W2S_ROW = 48                    # rows [48:176)  W2_self
W2N_ROW = W2S_ROW + HID         # rows [176:304) W2_nei
B2_ROW = W2N_ROW + HID          # row 304        b2   (rows 305..319 zero)
W1_BLOB_ROWS = B2_ROW + 16      # 320

# ----- fc weight blob layout: (W2_BLOB_ROWS, OUT_PAD) bf16 -----
BFC_ROW = HID                   # rows [0:128) Wfc, row 128 bfc (rest zero)
W2_BLOB_ROWS = HID + 16         # 144


def _gnn_kernel(g_ref, wa_ref, wb_ref, out_ref):
    # unpack blobs with static (zero-cost) slices
    x = g_ref[GB_X_ROW:GB_X_ROW + N_NODES, :]            # (16, 16)  bf16
    a = g_ref[GB_A_ROW:GB_A_ROW + N_NODES, :]            # (16, 16)  bf16
    p = g_ref[GB_P_ROW:GB_P_ROW + G_PAD, :]              # (8, 16)   bf16

    w1 = wa_ref[0:W1_ROWS, :]                            # (32, 128) bf16
    b1 = wa_ref[B1_ROW:B1_ROW + 1, :].astype(jnp.float32)
    w2 = wa_ref[W2S_ROW:W2N_ROW + HID, :]                # (256, 128) bf16
    b2 = wa_ref[B2_ROW:B2_ROW + 1, :].astype(jnp.float32)

    wfc = wb_ref[0:HID, :]                               # (128, 256) bf16
    bfc = wb_ref[BFC_ROW:BFC_ROW + 1, :].astype(jnp.float32)

    # --- GraphConv layer 1: relu([x | A@x] @ [W1s; W1n] + b1) ---
    agg1 = jnp.dot(a, x, preferred_element_type=jnp.float32)            # (16, 16)
    cat1 = jnp.concatenate([x, agg1.astype(jnp.bfloat16)], axis=-1)     # (16, 32)
    h1 = jnp.dot(cat1, w1, preferred_element_type=jnp.float32) + b1     # (16, 128)
    h1 = jnp.maximum(h1, 0.0)

    # --- GraphConv layer 2: relu([h1 | A@h1] @ [W2s; W2n] + b2) ---
    h1b = h1.astype(jnp.bfloat16)
    agg2 = jnp.dot(a, h1b, preferred_element_type=jnp.float32)          # (16, 128)
    cat2 = jnp.concatenate([h1b, agg2.astype(jnp.bfloat16)], axis=-1)   # (16, 256)
    h2 = jnp.dot(cat2, w2, preferred_element_type=jnp.float32) + b2     # (16, 128)
    h2 = jnp.maximum(h2, 0.0)

    # --- global mean pool + fc + sigmoid ---
    pooled = jnp.dot(p, h2.astype(jnp.bfloat16),
                     preferred_element_type=jnp.float32)                # (8, 128)
    logits = jnp.dot(pooled.astype(jnp.bfloat16), wfc,
                     preferred_element_type=jnp.float32) + bfc          # (8, 256)
    out_ref[...] = jax.nn.sigmoid(logits)


@jax.jit
def gnn_forward(graph_blob, w1_blob, w2_blob):
    vmem = pl.BlockSpec(memory_space=pltpu.MemorySpace.VMEM)
    out = pl.pallas_call(
        _gnn_kernel,
        out_shape=jax.ShapeDtypeStruct((G_PAD, OUT_PAD), jnp.float32),
        in_specs=[vmem, vmem, vmem],
        out_specs=vmem,
    )(graph_blob, w1_blob, w2_blob)
    return out[:G_GRAPHS, :OUT_F]


@jax.jit
def ref_forward(graph_blob, w1_blob, w2_blob):
    """Pure-JAX reference (f32 math on the same bf16-stored params)."""
    x = graph_blob[GB_X_ROW:GB_X_ROW + N_NODES].astype(jnp.float32)
    a = graph_blob[GB_A_ROW:GB_A_ROW + N_NODES].astype(jnp.float32)
    p = graph_blob[GB_P_ROW:GB_P_ROW + G_PAD].astype(jnp.float32)
    w1s = w1_blob[0:IN_PAD].astype(jnp.float32)
    w1n = w1_blob[IN_PAD:W1_ROWS].astype(jnp.float32)
    b1 = w1_blob[B1_ROW].astype(jnp.float32)
    w2s = w1_blob[W2S_ROW:W2S_ROW + HID].astype(jnp.float32)
    w2n = w1_blob[W2N_ROW:W2N_ROW + HID].astype(jnp.float32)
    b2 = w1_blob[B2_ROW].astype(jnp.float32)
    wfc = w2_blob[0:HID].astype(jnp.float32)
    bfc = w2_blob[BFC_ROW].astype(jnp.float32)

    h1 = jnp.maximum(x @ w1s + (a @ x) @ w1n + b1, 0.0)
    h2 = jnp.maximum(h1 @ w2s + (a @ h1) @ w2n + b2, 0.0)
    pooled = p @ h2
    return jax.nn.sigmoid(pooled @ wfc + bfc)[:G_GRAPHS, :OUT_F]


def make_param_blobs(key):
    ks = jax.random.split(key, 8)
    w1s = jax.random.normal(ks[0], (IN_F, HID), jnp.float32) * 0.1
    w1n = jax.random.normal(ks[1], (IN_F, HID), jnp.float32) * 0.1
    b1 = jax.random.normal(ks[2], (HID,), jnp.float32) * 0.1
    w2s = jax.random.normal(ks[3], (HID, HID), jnp.float32) * 0.05
    w2n = jax.random.normal(ks[4], (HID, HID), jnp.float32) * 0.05
    b2 = jax.random.normal(ks[5], (HID,), jnp.float32) * 0.1
    wfc = jax.random.normal(ks[6], (HID, OUT_F), jnp.float32) * 0.05
    bfc = jax.random.normal(ks[7], (OUT_F,), jnp.float32) * 0.1

    w1_blob = jnp.zeros((W1_BLOB_ROWS, HID), jnp.float32)
    w1_blob = w1_blob.at[0:IN_F, :].set(w1s)                       # W1_self (padded rows zero)
    w1_blob = w1_blob.at[IN_PAD:IN_PAD + IN_F, :].set(w1n)         # W1_nei
    w1_blob = w1_blob.at[B1_ROW, :].set(b1)
    w1_blob = w1_blob.at[W2S_ROW:W2S_ROW + HID, :].set(w2s)
    w1_blob = w1_blob.at[W2N_ROW:W2N_ROW + HID, :].set(w2n)
    w1_blob = w1_blob.at[B2_ROW, :].set(b2)

    w2_blob = jnp.zeros((W2_BLOB_ROWS, OUT_PAD), jnp.float32)
    w2_blob = w2_blob.at[0:HID, 0:OUT_F].set(wfc)                  # padded cols zero
    w2_blob = w2_blob.at[BFC_ROW, 0:OUT_F].set(bfc)

    return w1_blob.astype(jnp.bfloat16), w2_blob.astype(jnp.bfloat16)


if __name__ == "__main__":
    key = jax.random.PRNGKey(0)
    kx, kp = jax.random.split(key)

    # --- small deterministic batched graph: 2 bidirectional 8-node rings ---
    batch = np.array([0] * 8 + [1] * 8, dtype=np.int32)
    src, dst = [], []
    for g in range(G_GRAPHS):
        base = g * 8
        for i in range(8):
            j = (i + 1) % 8
            src += [base + i, base + j]
            dst += [base + j, base + i]
    edge_index = np.stack([np.array(src), np.array(dst)])  # (2, E)

    # dense adjacency A[dst, src] = 1
    a_np = np.zeros((N_NODES, N_NODES), np.float32)
    a_np[edge_index[1], edge_index[0]] = 1.0

    # mean-pool matrix P[g, i] = 1/|graph g|
    p_np = np.zeros((G_GRAPHS, N_NODES), np.float32)
    for g in range(G_GRAPHS):
        members = batch == g
        p_np[g, members] = 1.0 / members.sum()

    # node features (N, 3)
    x_np = np.asarray(jax.random.normal(kx, (N_NODES, IN_F), jnp.float32))

    # pack x / A / P into one bf16 graph blob (one DMA)
    gb = np.zeros((GB_ROWS, N_NODES), np.float32)
    gb[GB_X_ROW:GB_X_ROW + N_NODES, :IN_F] = x_np
    gb[GB_A_ROW:GB_A_ROW + N_NODES, :] = a_np
    gb[GB_P_ROW:GB_P_ROW + G_GRAPHS, :] = p_np
    graph_blob = jnp.asarray(gb).astype(jnp.bfloat16)

    w1_blob, w2_blob = make_param_blobs(kp)

    out = jax.block_until_ready(gnn_forward(graph_blob, w1_blob, w2_blob))
    ref = jax.block_until_ready(ref_forward(graph_blob, w1_blob, w2_blob))

    assert out.shape == (G_GRAPHS, OUT_F), out.shape
    assert bool(jnp.all(jnp.isfinite(out)))
    assert bool(jnp.allclose(out, ref, atol=5e-3, rtol=5e-3))
    print("KERNEL_OK")
</pallas_src>

<mosaic_0001>
module attributes {stable_mosaic.version = 11 : i64} {
  func.func @_gnn_kernel(%arg0: memref<48x16xbf16, #tpu.memory_space<vmem>>, %arg1: memref<320x128xbf16, #tpu.memory_space<vmem>>, %arg2: memref<144x256xbf16, #tpu.memory_space<vmem>>, %arg3: memref<8x256xf32, #tpu.memory_space<vmem>>) attributes {dimension_semantics = [], scalar_prefetch = 0 : i64, scratch_operands = 0 : i64, tpu.core_type = #tpu.core_type<tc>} {
    %c0 = arith.constant 0 : index
    %c0_0 = arith.constant 0 : index
    %0 = vector.load %arg0[%c0, %c0_0] : memref<48x16xbf16, #tpu.memory_space<vmem>>, vector<16x16xbf16>
    %c16 = arith.constant 16 : index
    %c0_1 = arith.constant 0 : index
    %1 = vector.load %arg0[%c16, %c0_1] : memref<48x16xbf16, #tpu.memory_space<vmem>>, vector<16x16xbf16>
    %c32 = arith.constant 32 : index
    %c0_2 = arith.constant 0 : index
    %2 = vector.load %arg0[%c32, %c0_2] : memref<48x16xbf16, #tpu.memory_space<vmem>>, vector<8x16xbf16>
    %c0_3 = arith.constant 0 : index
    %c0_4 = arith.constant 0 : index
    %3 = vector.load %arg1[%c0_3, %c0_4] : memref<320x128xbf16, #tpu.memory_space<vmem>>, vector<32x128xbf16>
    %c32_5 = arith.constant 32 : index
    %c0_6 = arith.constant 0 : index
    %4 = vector.load %arg1[%c32_5, %c0_6] : memref<320x128xbf16, #tpu.memory_space<vmem>>, vector<1x128xbf16>
    %5 = arith.extf %4 : vector<1x128xbf16> to vector<1x128xf32>
    %c48 = arith.constant 48 : index
    %c0_7 = arith.constant 0 : index
    %6 = vector.load %arg1[%c48, %c0_7] : memref<320x128xbf16, #tpu.memory_space<vmem>>, vector<256x128xbf16>
    %c304 = arith.constant 304 : index
    %c0_8 = arith.constant 0 : index
    %7 = vector.load %arg1[%c304, %c0_8] : memref<320x128xbf16, #tpu.memory_space<vmem>>, vector<1x128xbf16>
    %8 = arith.extf %7 : vector<1x128xbf16> to vector<1x128xf32>
    %c0_9 = arith.constant 0 : index
    %c0_10 = arith.constant 0 : index
    %9 = vector.load %arg2[%c0_9, %c0_10] : memref<144x256xbf16, #tpu.memory_space<vmem>>, vector<128x256xbf16>
    %c128 = arith.constant 128 : index
    %c0_11 = arith.constant 0 : index
    %10 = vector.load %arg2[%c128, %c0_11] : memref<144x256xbf16, #tpu.memory_space<vmem>>, vector<1x256xbf16>
    %11 = arith.extf %10 : vector<1x256xbf16> to vector<1x256xf32>
    %cst = arith.constant dense<0.000000e+00> : vector<16x16xf32>
    %12 = tpu.matmul %1, %0, %cst {dimension_numbers = #tpu.dot_dimension_numbers<[1], [0], [0], [1], [0, 0, 1, 1], [], []>} : vector<16x16xbf16>, vector<16x16xbf16>, vector<16x16xf32> -> vector<16x16xf32>
    %13 = arith.truncf %12 : vector<16x16xf32> to vector<16x16xbf16>
    %14 = tpu.concatenate %0, %13 in 1 : vector<16x16xbf16>, vector<16x16xbf16> -> vector<16x32xbf16>
    %cst_12 = arith.constant dense<0.000000e+00> : vector<16x128xf32>
    %15 = tpu.matmul %14, %3, %cst_12 {dimension_numbers = #tpu.dot_dimension_numbers<[1], [0], [0], [1], [0, 0, 1, 1], [], []>} : vector<16x32xbf16>, vector<32x128xbf16>, vector<16x128xf32> -> vector<16x128xf32>
    %16 = vector.broadcast %5 : vector<1x128xf32> to vector<16x128xf32>
    %17 = arith.addf %15, %16 : vector<16x128xf32>
    %cst_13 = arith.constant 0.000000e+00 : f32
    %18 = vector.broadcast %cst_13 : f32 to vector<16x128xf32>
    %19 = arith.maximumf %17, %18 : vector<16x128xf32>
    %20 = arith.truncf %19 : vector<16x128xf32> to vector<16x128xbf16>
    %cst_14 = arith.constant dense<0.000000e+00> : vector<16x128xf32>
    %21 = tpu.matmul %1, %20, %cst_14 {dimension_numbers = #tpu.dot_dimension_numbers<[1], [0], [0], [1], [0, 0, 1, 1], [], []>} : vector<16x16xbf16>, vector<16x128xbf16>, vector<16x128xf32> -> vector<16x128xf32>
    %22 = arith.truncf %21 : vector<16x128xf32> to vector<16x128xbf16>
    %23 = tpu.concatenate %20, %22 in 1 : vector<16x128xbf16>, vector<16x128xbf16> -> vector<16x256xbf16>
    %cst_15 = arith.constant dense<0.000000e+00> : vector<16x128xf32>
    %24 = tpu.matmul %23, %6, %cst_15 {dimension_numbers = #tpu.dot_dimension_numbers<[1], [0], [0], [1], [0, 0, 1, 1], [], []>} : vector<16x256xbf16>, vector<256x128xbf16>, vector<16x128xf32> -> vector<16x128xf32>
    %25 = vector.broadcast %8 : vector<1x128xf32> to vector<16x128xf32>
    %26 = arith.addf %24, %25 : vector<16x128xf32>
    %cst_16 = arith.constant 0.000000e+00 : f32
    %27 = vector.broadcast %cst_16 : f32 to vector<16x128xf32>
    %28 = arith.maximumf %26, %27 : vector<16x128xf32>
    %29 = arith.truncf %28 : vector<16x128xf32> to vector<16x128xbf16>
    %cst_17 = arith.constant dense<0.000000e+00> : vector<8x128xf32>
    %30 = tpu.matmul %2, %29, %cst_17 {dimension_numbers = #tpu.dot_dimension_numbers<[1], [0], [0], [1], [0, 0, 1, 1], [], []>} : vector<8x16xbf16>, vector<16x128xbf16>, vector<8x128xf32> -> vector<8x128xf32>
    %31 = arith.truncf %30 : vector<8x128xf32> to vector<8x128xbf16>
    %cst_18 = arith.constant dense<0.000000e+00> : vector<8x256xf32>
    %32 = tpu.matmul %31, %9, %cst_18 {dimension_numbers = #tpu.dot_dimension_numbers<[1], [0], [0], [1], [0, 0, 1, 1], [], []>} : vector<8x128xbf16>, vector<128x256xbf16>, vector<8x256xf32> -> vector<8x256xf32>
    %33 = vector.broadcast %11 : vector<1x256xf32> to vector<8x256xf32>
    %34 = arith.addf %32, %33 : vector<8x256xf32>
    %35 = arith.negf %34 : vector<8x256xf32>
    %36 = math.exp %35 : vector<8x256xf32>
    %cst_19 = arith.constant 1.000000e+00 : f32
    %37 = vector.broadcast %cst_19 : f32 to vector<8x256xf32>
    %38 = arith.addf %37, %36 : vector<8x256xf32>
    %39 = arith.divf %37, %38 : vector<8x256xf32>
    %c0_20 = arith.constant 0 : index
    %c0_21 = arith.constant 0 : index
    %40 = vector.load %arg3[%c0_20, %c0_21] : memref<8x256xf32, #tpu.memory_space<vmem>>, vector<8x256xf32>
    tpu.vector_store %arg3[%c0_20, %c0_21], %39 {strides = array<i32>} : memref<8x256xf32, #tpu.memory_space<vmem>>, vector<8x256xf32>,
    return
  }
}

</mosaic_0001>

<bundles_post_ra>
// kernel: gnn_forward.1
= control target key start
LH: loop header
LB: loop body
LE: loop exit
PB: predicated region body
PF: predicated region fallthrough
CT: control target
= control target key end

     0   :  { %8 = vsyncpa [#allocation3], 0  ;;  %s917_s0 = inlined_call_operand.vmem [shape: bf16[48,16], index: 0, kind: input, shape index: {}]   ;;  %s918_s1 = inlined_call_operand.hbm [shape: bf16[320,128], index: 1, kind: input, shape index: {}]   ;;  %s919_s2 = inlined_call_operand.hbm [shape: bf16[144,256], index: 2, kind: input, shape index: {}]   ;;  %s920_s3 = inlined_call_operand.vmem [shape: f32[8,256], index: 3, kind: output, shape index: {}]  }
   0x1   :  { %9 = vsyncpa [#allocation5], 0  ;;  %s821_s12 = smov [#allocation2]   ;;  %s773_s16 = scalar_lea.hbm %s918_s1, 2560 }
   0x2   :  { %s17_s13 = sshll.u32 %s821_s12, 4  ;;  %p774_p0 = scmp.ne.s32.totalorder %s918_s1, %s773_s16  ;;  %s18_s13 = int_to_ptr.vmem [resolvable:$true] %s17_s13 }
   0x3   :  { %p777_p1 = scmp.lt.u32.totalorder %s773_s16, %s918_s1 }
   0x5   :  { %p779_p2 = pnand %p777_p1, %p774_p0 }
   0x7   :  { %782 = shalt.err (!%p779_p2)
}
   0x8   :  { %s783_s21 = scalar_lea.vmem %s18_s13, 2560  ;;  %p788_p4 = scmp.lt.s32.totalorder %s18_s13, %s18_s13 }
   0x9   :  { %p784_p3 = scmp.ne.s32.totalorder %s18_s13, %s783_s21  ;;  %p789_p5 = scmp.lt.s32.totalorder %s783_s21, %s783_s21 }
   0xb   :  { %p790_p6 = por %p789_p5, %p788_p4 }
   0xd   :  { %p791_p7 = pnand %p790_p6, %p784_p3 }
   0xf   :  { %794 = shalt.err (!%p791_p7)
}
  0x10   :  { %s822_s22 = smov 64   ;;  %s823_s23 = smov 4  }
  0x11   :  { %23 = dma.hbm_to_vmem [thread:$0]  %s918_s1, 2560, %s18_s13, [#allocation3], %s822_s22, %s822_s22, %s823_s23  }
  0x12   :  { %s824_s26 = smov [#allocation4]   ;;  %s795_s30 = scalar_lea.hbm %s919_s2, 2304 }
  0x13   :  { %s29_s27 = sshll.u32 %s824_s26, 4  ;;  %p796_p8 = scmp.ne.s32.totalorder %s919_s2, %s795_s30  ;;  %s30_s27 = int_to_ptr.vmem [resolvable:$true] %s29_s27 }
  0x14   :  { %p799_p9 = scmp.lt.u32.totalorder %s795_s30, %s919_s2 }
  0x16   :  { %p801_p10 = pnand %p799_p9, %p796_p8 }
  0x18   :  { %804 = shalt.err (!%p801_p10)
}
  0x19   :  { %s805_s8 = scalar_lea.vmem %s30_s27, 2304  ;;  %p810_p12 = scmp.lt.s32.totalorder %s30_s27, %s30_s27 }
  0x1a   :  { %p806_p11 = scmp.ne.s32.totalorder %s30_s27, %s805_s8  ;;  %p811_p13 = scmp.lt.s32.totalorder %s805_s8, %s805_s8 }
  0x1c   :  { %p812_p0 = por %p811_p13, %p810_p12 }
  0x1e   :  { %p813_p1 = pnand %p812_p0, %p806_p11 }
  0x20   :  { %816 = shalt.err (!%p813_p1)
}
  0x21   :  { %s825_s1 = smov 128   ;;  %s826_s9 = smov 8  }
  0x22   :  { %35 = dma.hbm_to_vmem [thread:$0]  %s919_s2, 2304, %s30_s27, [#allocation5], %s825_s1, %s825_s1, %s826_s9  }
  0x23   :  { %817 = dma.done.wait [#allocation3], 2560  }
  0x24   :  { %818 = vsyncadd [#allocation3], 4294964736 }
  0x25   :  { %819 = dma.done.wait [#allocation5], 2304  }
  0x26   :  { %820 = vsyncadd [#allocation5], 4294964992  ;;  %v827_v0 = vmov 0.0   ;;  %vm828_vm0 = vmmov 0   ;;  %v721_v1 = vld [vmem:[%s917_s0] sm:$0xff]   ;;  %v887_v2 = vld [vmem:[%s917_s0 + $0x8] sm:$0xff]   ;;  %v170_v26 = vlaneseq }
  0x27   :  { %685 = vmatprep.subr.bf16.mxu1 %v827_v0  ;;  %687 = vmatprep.mubr.msk.bf16.mxu1 %vm828_vm0, %v827_v0  ;;  %vm118_vm1 = vcmask 130048   ;;  %v723_v3 = vld [vmem:[#allocation2] sm:$0xff]   ;;  %v724_v4 = vld [vmem:[#allocation2 + $0x8] sm:$0xff]   ;;  %s829_s15 = smov 16   ;;  %vm186_vm2 = vcmask 261120   ;;  %v725_v12 = vld [vmem:[#allocation2 + $0x58] sm:$0xff]  }
  0x28   :  { %699 = vmatprep.subr.bf16.mxu0 %v827_v0  ;;  %701 = vmatprep.mubr.msk.bf16.mxu0 %vm828_vm0, %v827_v0  ;;  %v726_v13 = vld [vmem:[#allocation2 + $0x18] sm:$0xff]   ;;  %v727_v14 = vld [vmem:[#allocation2 + $0x60] sm:$0xff]   ;;  %v729_v16 = vld [vmem:[#allocation2 + $0x68] sm:$0xff]   ;;  %v171_v27 = vshrl.u32 %v170_v26, 7 }
  0x29   :  { %686 = vmatpush3.bf16.msra.mxu1 %v721_v1  ;;  %v728_v15 = vld [vmem:[#allocation2 + $0x20] sm:$0xff]   ;;  %v730_v17 = vld [vmem:[#allocation2 + $0x28] sm:$0xff]   ;;  %v731_v18 = vld [vmem:[#allocation2 + $0x70] sm:$0xff]  }
  0x2a   :  { %691 = vmatprep.subr.bf16.mxu1 %v827_v0  ;;  %v732_v19 = vld [vmem:[#allocation2 + $0x30] sm:$0xff]   ;;  %v733_v20 = vld [vmem:[#allocation2 + $0x78] sm:$0xff]   ;;  %v735_v22 = vld [vmem:[#allocation2 + $0x80] sm:$0xff]   ;;  %v896_v30 = vsub.s32 0, %v171_v27 }
  0x2b   :  { %v734_v21 = vld [vmem:[#allocation2 + $0x38] sm:$0xff]   ;;  %v736_v23 = vld [vmem:[#allocation2 + $0x40] sm:$0xff]   ;;  %v737_v24 = vld [vmem:[#allocation2 + $0x88] sm:$0xff]  }
  0x2c   :  { %688 = vmatmul.mubr.msk.bf16.vlgmr.msra.gmra.mrb[0].mxu1 %vm118_vm1, %v887_v2  ;;  %v738_v25 = vld [vmem:[#allocation2 + $0x48] sm:$0xff]   ;;  %v52_v28 = vld [vmem:[#allocation2 + $0x10] sm:$0x1]  ;;  %v86_v48 = vld [vmem:[#allocation2 + $0x98] sm:$0x1] }
  0x2d   :  { %695 = vmatprep.mubr.msk.bf16.mxu1 %vm828_vm0, %v827_v0  ;;  %692 = vmatpush3.bf16.msra.mxu1 %v723_v3  ;;  %v53_v29 = vunpack.c.l.bf16 %v52_v28  ;;  %v739_v41 = vld [vmem:[#allocation2 + $0x90] sm:$0xff]   ;;  %v87_v49 = vunpack.c.l.bf16 %v86_v48  ;;  %v743_v61 = vld [vmem:[#allocation4 + $0x4] ss:$8 sps:$4 sm:$0xff]  }
  0x2e   :  { %693 = vmatprep.subr.bf16.mxu1 %v827_v0  ;;  %v740_v42 = vld [vmem:[#allocation2 + $0x50] sm:$0xff]   ;;  %v749_v3 = vld [vmem:[#allocation4 + $0x24] ss:$8 sps:$4 sm:$0xff]  }
  0x2f   :  { %v173_v31 = vrot.slane %v53_v29, %v896_v30  ;;  %v278_v51 = vrot.slane %v87_v49, %v896_v30  ;;  %v47_v63 = vld [vmem:[%s917_s0 + $0x10] sm:$0xf] }
  0x31   :  { %694 = vmatpush3.bf16.msra.mxu1 %v724_v4  ;;  %v747_v4 = vld [vmem:[#allocation4 + $0x20] ss:$8 sps:$4 sm:$0xff]  }
  0x32   :  { %661 = vmatprep.subr.bf16.mxu1 %v725_v12  ;;  %v759_v12 = vld [vmem:[#allocation4 + $0x60] ss:$8 sps:$4 sm:$0xff]  }
  0xff   :  { %v156_v5 = vpop.f32.mrb[0].mxu1 }
 0x100   :  { %v689_v6 = vpop.f32.mrb[1].mxu1 }
 0x101   :  { %v159_v7 = vpop.f32.mrb[2].mxu1  ;;  %v750_v6 = vld [vmem:[#allocation4 + $0x30] ss:$8 sps:$4 sm:$0xff]  }
 0x102   :  { %v163_v8 = vpack.c.bf16 %v159_v7, %v156_v5  ;;  %v690_v9 = vpop.f32.mrb[3].mxu1  ;;  %v752_v5 = vld [vmem:[#allocation4 + $0x34] ss:$8 sps:$4 sm:$0xff]   ;;  %v755_v7 = vld [vmem:[#allocation4 + $0x44] ss:$8 sps:$4 sm:$0xff]  }
 0x103   :  { %v758_v9 = vld [vmem:[#allocation4 + $0x54] ss:$8 sps:$4 sm:$0xff]  }
 0x104   :  { %165 = vrot.lane.b32.xlu0 %v163_v8, %s829_s15  ;;  %v753_v8 = vld [vmem:[#allocation4 + $0x40] ss:$8 sps:$4 sm:$0xff]  }
 0x176   :  { %v166_v10 = vpop.permute.xlu0 %165 }
 0x177   :  { %v169_v11 = vsel %vm118_vm1, %v721_v1, %v166_v10  ;;  %v746_v1 = vld [vmem:[#allocation4 + $0x14] ss:$8 sps:$4 sm:$0xff]   ;;  %v756_v10 = vld [vmem:[#allocation4 + $0x50] ss:$8 sps:$4 sm:$0xff]  }
 0x178   :  { %696 = vmatmul.mubr.msk.bf16.vlgmr.msra.gmra.mrb[4].mxu1 %vm186_vm2, %v169_v11  ;;  %v761_v11 = vld [vmem:[#allocation4 + $0x64] ss:$8 sps:$4 sm:$0xff]  }
 0x179   :  { %662 = vmatpush3.bf16.msra.mxu1 %v726_v13  ;;  %v764_v13 = vld [vmem:[#allocation4 + $0x74] ss:$8 sps:$4 sm:$0xff]  }
 0x17a   :  { %663 = vmatprep.subr.bf16.mxu1 %v727_v14  ;;  %v762_v14 = vld [vmem:[#allocation4 + $0x70] ss:$8 sps:$4 sm:$0xff]  }
 0x17d   :  { %664 = vmatpush3.bf16.msra.mxu1 %v728_v15  ;;  %v830_v15 = vmov 0  }
 0x17e   :  { %665 = vmatprep.subr.bf16.mxu1 %v729_v16 }
 0x181   :  { %666 = vmatpush3.bf16.msra.mxu1 %v730_v17 }
 0x182   :  { %667 = vmatprep.subr.bf16.mxu1 %v731_v18 }
 0x185   :  { %668 = vmatpush3.bf16.msra.mxu1 %v732_v19 }
 0x186   :  { %669 = vmatprep.subr.bf16.mxu1 %v733_v20 }
 0x189   :  { %670 = vmatpush3.bf16.msra.mxu1 %v734_v21  ;;  %v104_v21 = vld [vmem:[#allocation4 + $0x80] sm:$0x11] }
 0x18a   :  { %671 = vmatprep.subr.bf16.mxu1 %v735_v22  ;;  %v105_v22 = vunpack.c.l.bf16 %v104_v21 }
 0x18d   :  { %672 = vmatpush3.bf16.msra.mxu1 %v736_v23  ;;  %v106_v23 = vunpack.c.h.bf16 %v104_v21 }
 0x18e   :  { %673 = vmatprep.subr.bf16.mxu1 %v737_v24  ;;  %v466_v24 = vrot.slane %v105_v22, %v896_v30 }
 0x191   :  { %674 = vmatpush3.bf16.msra.mxu1 %v738_v25  ;;  %v470_v25 = vrot.slane %v106_v23, %v896_v30 }
 0x192   :  { %675 = vmatprep.subr.bf16.mxu1 %v739_v41 }
 0x195   :  { %676 = vmatpush3.bf16.msra.mxu1 %v740_v42 }
 0x24b   :  { %v223_v32 = vpop.f32.mrb[4].mxu1 }
 0x24c   :  { %v224_v33 = vadd.f32 %v223_v32, %v173_v31  ;;  %v697_v34 = vpop.f32.mrb[5].mxu1 }
 0x24d   :  { %v226_v35 = vpop.f32.mrb[6].mxu1 }
 0x24e   :  { %v227_v36 = vadd.f32 %v226_v35, %v173_v31  ;;  %v698_v37 = vpop.f32.mrb[7].mxu1  ;;  %v230_v38 = vmax.f32 %v224_v33, 0.0 }
 0x250   :  { %v231_v39 = vmax.f32 %v227_v36, 0.0 }
 0x252   :  { %v232_v40 = vpack.c.bf16 %v231_v39, %v230_v38 }
 0x254   :  { %700 = vmatpush3.bf16.msra.mxu0 %v232_v40 }
 0x255   :  { %705 = vmatprep.subr.bf16.mxu0 %v827_v0 }
 0x257   :  { %702 = vmatmul.mubr.msk.bf16.vlgmr.msra.gmra.mrb[0].mxu0 %vm118_vm1, %v887_v2  ;;  %v744_v2 = vld [vmem:[#allocation4 + $0x10] ss:$8 sps:$4 sm:$0xff]  }
 0x258   :  { %707 = vmatprep.mubr.msk.bf16.mxu0 %vm828_vm0, %v827_v0  ;;  %v741_v0 = vld [vmem:[#allocation4] ss:$8 sps:$4 sm:$0xff]  }
 0x32a   :  { %v267_v43 = vpop.f32.mrb[0].mxu0 }
 0x32b   :  { %v703_v44 = vpop.f32.mrb[1].mxu0 }
 0x32c   :  { %v270_v45 = vpop.f32.mrb[2].mxu0 }
 0x32d   :  { %v274_v46 = vpack.c.bf16 %v270_v45, %v267_v43  ;;  %v704_v47 = vpop.f32.mrb[3].mxu0 }
 0x32f   :  { %407 = vmatprep.mubr.bf16.mxu1 %v274_v46 }
 0x330   :  { %408 = vmatmul.mubr.bf16.vlgmr.msra.gmra.mrb[8].mxu1 %v232_v40 }
 0x403   :  { %v677_v50 = vpop.f32.mrb[8].mxu1 }
 0x404   :  { %v678_v52 = vpop.f32.mrb[9].mxu1 }
 0x405   :  { %v679_v53 = vadd.f32 %v678_v52, %v677_v50  ;;  %v680_v54 = vpop.f32.mrb[10].mxu1 }
 0x406   :  { %v681_v55 = vpop.f32.mrb[11].mxu1 }
 0x407   :  { %v410_v56 = vadd.f32 %v679_v53, %v278_v51  ;;  %v682_v57 = vadd.f32 %v681_v55, %v680_v54 }
 0x409   :  { %v413_v58 = vadd.f32 %v682_v57, %v278_v51  ;;  %v416_v59 = vmax.f32 %v410_v56, 0.0 }
 0x40b   :  { %v417_v60 = vmax.f32 %v413_v58, 0.0 }
 0x40d   :  { %v418_v62 = vpack.c.bf16 %v417_v60, %v416_v59 }
 0x40f   :  { %706 = vmatpush3.bf16.msra.mxu0 %v418_v62 }
 0x410   :  { %551 = vmatprep.subr.bf16.mxu0 %v743_v61 }
 0x412   :  { %708 = vmatmul.mubr.msk.bf16.vlgmr.msra.gmra.mrb[4].mxu0 %vm118_vm1, %v47_v63 }
 0x413   :  { %552 = vmatpush1.bf16.msra.mxu0 %v741_v0  ;;  %583 = vmatprep.mubr.bf16.mxu0 %v830_v15 }
 0x414   :  { %553 = vmatprep.subr.bf16.mxu0 %v746_v1 }
 0x417   :  { %554 = vmatpush1.bf16.msra.mxu0 %v744_v2 }
 0x418   :  { %555 = vmatprep.subr.bf16.mxu0 %v749_v3 }
 0x41b   :  { %556 = vmatpush1.bf16.msra.mxu0 %v747_v4 }
 0x41c   :  { %557 = vmatprep.subr.bf16.mxu0 %v752_v5 }
 0x41f   :  { %558 = vmatpush1.bf16.msra.mxu0 %v750_v6 }
 0x420   :  { %559 = vmatprep.subr.bf16.mxu0 %v755_v7 }
 0x423   :  { %560 = vmatpush1.bf16.msra.mxu0 %v753_v8 }
 0x424   :  { %561 = vmatprep.subr.bf16.mxu0 %v758_v9 }
 0x427   :  { %562 = vmatpush1.bf16.msra.mxu0 %v756_v10 }
 0x428   :  { %563 = vmatprep.subr.bf16.mxu0 %v761_v11 }
 0x42b   :  { %564 = vmatpush1.bf16.msra.mxu0 %v759_v12 }
 0x42c   :  { %565 = vmatprep.subr.bf16.mxu0 %v764_v13 }
 0x42f   :  { %566 = vmatpush1.bf16.msra.mxu0 %v762_v14 }
 0x4e5   :  { %v456_v16 = vpop.f32.mrb[4].mxu0 }
 0x4e6   :  { %v462_v17 = vpack.c.bf16 %v456_v16, %v456_v16  ;;  %v709_v18 = vpop.f32.mrb[5].mxu0 }
 0x4e7   :  { %v459_v19 = vpop.f32.mrb[6].mxu0 }
 0x4e8   :  { %v710_v20 = vpop.f32.mrb[7].mxu0  ;;  %584 = vmatmul.mubr.bf16.vlgmr.msra.gmra.mrb[8].mxu0 %v462_v17 }
 0x5bb   :  { %v585_v26 = vpop.f32.mrb[8].mxu0 }
 0x5bc   :  { %v586_v27 = vadd.f32 %v585_v26, %v466_v24  ;;  %v587_v28 = vpop.f32.mrb[9].mxu0 }
 0x5bd   :  { %v588_v29 = vadd.f32 %v587_v28, %v470_v25  ;;  %v589_v31 = vpop.f32.mrb[10].mxu0 }
 0x5be   :  { %v652_v32 = vmul.f32 -1.442695, %v586_v27  ;;  %v590_v33 = vpop.f32.mrb[11].mxu0 }
 0x5bf   :  { %v653_v34 = vmul.f32 -1.442695, %v588_v29 }
 0x5c0   :  { %765 = vpow2.f32 %v652_v32 }
 0x5c1   :  { %767 = vpow2.f32 %v653_v34 }
 0x5ca   :  { %v766_v35 = vpop.eup %765 }
 0x5cb   :  { %v768_v36 = vpop.eup %767  ;;  %v598_v37 = vadd.f32 1.0, %v766_v35 }
 0x5cc   :  { %v599_v38 = vadd.f32 1.0, %v768_v36 }
 0x5cd   :  { %769 = vrcp.f32 %v598_v37 }
 0x5ce   :  { %771 = vrcp.f32 %v599_v38 }
 0x5d7   :  { %v770_v39 = vpop.eup %769 }
 0x5d8   :  { %v772_v40 = vpop.eup %771  ;;  %604 = vst [vmem:[%s920_s3] sm:$0xff] %v770_v39 }
 0x5d9   :  { %605 = vst [vmem:[%s920_s3 + $0x8] sm:$0xff] %v772_v40 }
 0x5da   :  { %610 = vsyncpa [#allocation3], 1 }
 0x5db   :  { %611 = vsyncpa [#allocation5], 1 }

</bundles_post_ra>
